<compile_context>
chip_gen: v6e
topology: v6e:2x2x1
jax: 0.10.0
libtpu: 0.0.40
codegen_flags: <defaults>
</compile_context>

<pallas_src>
import functools

import jax
import jax.numpy as jnp
from jax import lax
from jax.experimental import pallas as pl
from jax.experimental.pallas import tpu as pltpu

_CORE_SPLITS = 2  # leading "parallel" grid axis: feeds both TCs on v7x, harmless elsewhere


def _round_up(x, m):
    return ((x + m - 1) // m) * m


def _ceil_div(a, b):
    return -(-a // b)


def _focal_loss_kernel(y_true_ref, y_pred_ref, w_ref, out_ref, acc_ref, *,
                       gamma, n_tiles, tile_b, batch):
    c = pl.program_id(0)  # core split ("parallel")
    i = pl.program_id(1)  # reduction axis within a core split ("arbitrary")

    @pl.when(i == 0)
    def _init():
        acc_ref[0] = jnp.float32(0.0)

    labels = y_true_ref[...]                                             # (TB, 1) int32
    p = jnp.clip(y_pred_ref[...].astype(jnp.float32), 0.01, 1.0 - 0.01)  # (TB, C)
    w = w_ref[...]                                                       # (1, C)  f32

    # One-hot of the labeled class per row.
    cls_idx = lax.broadcasted_iota(jnp.int32, p.shape, 1)
    onehot = (cls_idx == labels).astype(jnp.float32)                     # (TB, C)

    # Select-then-transform: reduce to the labeled class per row (XLU) so the
    # log / pow below run on a (TB, 1) column instead of the full (TB, C) tile.
    p_sel = jnp.sum(onehot * p, axis=-1, keepdims=True)                  # (TB, 1)
    w_sel = jnp.sum(onehot * w, axis=-1, keepdims=True)                  # (TB, 1)

    logp = jnp.log(p_sel + 0.01)
    margin = (1.0 - 0.01) - p_sel
    if float(gamma) == int(gamma):
        margin_pow = lax.integer_pow(margin, int(gamma))                 # VPU only
    else:
        # Float gamma: margin is exactly 0 when y_pred clips at 0.99; guard
        # exp(gamma * log(0)) from surfacing NaN.
        margin_pow = jnp.where(margin > 0.0,
                               jnp.maximum(margin, 1e-30) ** gamma,
                               jnp.float32(0.0))

    # focal + active + bce fused:
    #   -m^g*logp*w + m*w - logp*w  ==  w * (m - (m^g + 1) * logp)
    term = w_sel * (margin - (margin_pow + 1.0) * logp)                  # (TB, 1)

    # Mask rows past the true batch (ragged tail / clamped duplicate blocks).
    # OOB rows may contain garbage (even NaN bit patterns); the select drops
    # them regardless of what the arithmetic above produced.
    row = lax.broadcasted_iota(jnp.int32, term.shape, 0)
    global_row = (c * n_tiles + i) * tile_b + row
    term = jnp.where(global_row < batch, term, jnp.float32(0.0))

    acc_ref[0] = acc_ref[0] + jnp.sum(term)

    @pl.when(i == pl.num_programs(1) - 1)
    def _finalize():
        out_ref[0, 0] = acc_ref[0]


def focal_loss(y_true, y_pred, class_weight, gamma=2):
    """y_true: (B, 1) int class indices; y_pred: (B, C) probabilities;
    class_weight: (C,). Returns scalar loss matching the PyTorch forward."""
    B, C = y_pred.shape
    w2d = jnp.asarray(class_weight, jnp.float32).reshape(1, C)
    yt = jnp.asarray(y_true, jnp.int32).reshape(B, 1)

    # --- batch tiling: biggest tile whose double-buffered y_pred slab stays
    # comfortably inside VMEM on every generation (v7x: 64 MiB physical). ---
    itemsize = jnp.dtype(y_pred.dtype).itemsize
    budget_bytes = 8 * 1024 * 1024                       # per-buffer y_pred budget
    max_rows = max(8, budget_bytes // max(1, C * itemsize))
    half = _ceil_div(B, _CORE_SPLITS)                    # rows per core split (ceil)
    tile_b = min(4096, max_rows, _round_up(half, 8))
    tile_b = max(8, (tile_b // 8) * 8)                   # sublane-aligned

    n_blocks = _ceil_div(B, tile_b)                      # real blocks needed to cover B
    core_splits = _CORE_SPLITS if n_blocks >= _CORE_SPLITS else 1
    n_tiles = _ceil_div(n_blocks, core_splits)           # grid steps per core split
    max_blk = n_blocks - 1

    kernel = functools.partial(_focal_loss_kernel, gamma=gamma,
                               n_tiles=n_tiles, tile_b=tile_b, batch=B)

    # Clamp the block index so surplus blocks (from the core split) never start
    # a DMA past the array end; their contribution is zeroed by the row mask.
    def row_blk(c, i):
        return (jnp.minimum(c * n_tiles + i, max_blk), 0)

    cost = pl.CostEstimate(
        flops=int(6 * B * C + 12 * B),
        transcendentals=int(B),                          # one log per row after rewrite
        bytes_accessed=int(B * C * itemsize + B * 4 + C * 4 + 8),
    )

    partials = pl.pallas_call(
        kernel,
        out_shape=jax.ShapeDtypeStruct((core_splits, 1), jnp.float32),
        grid=(core_splits, n_tiles),
        in_specs=[
            pl.BlockSpec((tile_b, 1), row_blk),                          # y_true
            pl.BlockSpec((tile_b, C), row_blk),                          # y_pred
            pl.BlockSpec((1, C), lambda c, i: (0, 0)),                   # weights (resident)
        ],
        out_specs=pl.BlockSpec((1, 1), lambda c, i: (c, 0),
                               memory_space=pltpu.SMEM),
        scratch_shapes=[pltpu.SMEM((1,), jnp.float32)],                  # running sum
        compiler_params=pltpu.CompilerParams(
            dimension_semantics=("parallel", "arbitrary"),
            vmem_limit_bytes=48 * 1024 * 1024,
        ),
        cost_estimate=cost,
    )(yt, y_pred, w2d)

    total = jnp.sum(partials)                            # combine per-core partials
    denom = jnp.sum(w2d) * jnp.float32(B)                # hoisted, applied once
    return total / denom


def focal_loss_ref(y_true, y_pred, class_weight, gamma=2):
    """Plain-JAX reference matching the PyTorch forward exactly."""
    B, C = y_pred.shape
    onehot = jax.nn.one_hot(y_true[:, 0], C, dtype=jnp.float32)
    y_pred = jnp.clip(y_pred.astype(jnp.float32), 0.01, 1.0 - 0.01)
    w = jnp.asarray(class_weight, jnp.float32)
    focal = -onehot * (1.0 - 0.01 - y_pred) ** gamma * jnp.log(y_pred + 0.01) * w
    active = onehot * (1.0 - 0.01 - y_pred) * w
    bce = -onehot * jnp.log(y_pred + 0.01) * w
    loss = jnp.sum(focal) + jnp.sum(active) + jnp.sum(bce)
    return loss / (jnp.sum(w) * B)


if __name__ == "__main__":
    class_weight = jnp.array([1.0, 2.0, 0.5, 1.5], dtype=jnp.float32)
    key = jax.random.PRNGKey(0)
    k1, k2, k3, k4 = jax.random.split(key, 4)

    # Case 1: tile-aligned batch, integer gamma.
    B, C = 8, 4
    y_true = jax.random.randint(k1, (B, 1), 0, C, dtype=jnp.int32)
    y_pred = jax.nn.softmax(jax.random.normal(k2, (B, C), dtype=jnp.float32), axis=-1)
    loss = jax.block_until_ready(focal_loss(y_true, y_pred, class_weight, gamma=2))
    ref = focal_loss_ref(y_true, y_pred, class_weight, gamma=2)
    assert jnp.allclose(loss, ref, rtol=1e-5, atol=1e-6), (loss, ref)

    # Case 2: ragged batch (exercises the in-kernel row mask), float gamma.
    B2 = 13
    y_true2 = jax.random.randint(k3, (B2, 1), 0, C, dtype=jnp.int32)
    y_pred2 = jax.nn.softmax(jax.random.normal(k4, (B2, C), dtype=jnp.float32), axis=-1)
    loss2 = jax.block_until_ready(focal_loss(y_true2, y_pred2, class_weight, gamma=2.5))
    ref2 = focal_loss_ref(y_true2, y_pred2, class_weight, gamma=2.5)
    assert jnp.allclose(loss2, ref2, rtol=1e-5, atol=1e-6), (loss2, ref2)

    print("KERNEL_OK")
</pallas_src>

<mosaic_0001>
module attributes {stable_mosaic.version = 11 : i64} {
  func.func @_focal_loss_kernel(%arg0: i32, %arg1: i32, %arg2: memref<8x1xi32, #tpu.memory_space<vmem>>, %arg3: memref<8x4xf32, #tpu.memory_space<vmem>>, %arg4: memref<1x4xf32, #tpu.memory_space<vmem>>, %arg5: memref<1x1xf32, #tpu.memory_space<smem>>, %arg6: memref<1xf32, #tpu.memory_space<smem>>) attributes {dimension_semantics = [#tpu.dimension_semantics<parallel>, #tpu.dimension_semantics<arbitrary>], iteration_bounds = array<i64: 1, 1>, scalar_prefetch = 0 : i64, scratch_operands = 1 : i64, tpu.core_type = #tpu.core_type<tc>, window_params = [{transform_indices = @transform_0, window_bounds = array<i64: 8, 1>}, {transform_indices = @transform_1, window_bounds = array<i64: 8, 4>}, {pipeline_mode = #tpu.pipeline_mode<synchronous>, transform_indices = @transform_2, window_bounds = array<i64: 1, 4>}, {transform_indices = @transform_3, window_bounds = array<i64: 1, 1>}]} {
    %c0_i32 = arith.constant 0 : i32
    %0 = arith.cmpi eq, %arg1, %c0_i32 : i32
    %1 = arith.extui %0 : i1 to i32
    %c0_i32_0 = arith.constant 0 : i32
    %2 = arith.cmpi ne, %1, %c0_i32_0 : i32
    scf.if %2 {
      %cst_19 = arith.constant 0.000000e+00 : f32
      %c0_20 = arith.constant 0 : index
      %53 = memref.load %arg6[%c0_20] : memref<1xf32, #tpu.memory_space<smem>>
      memref.store %cst_19, %arg6[%c0_20] : memref<1xf32, #tpu.memory_space<smem>>
    } else {
    }
    %c0 = arith.constant 0 : index
    %c0_1 = arith.constant 0 : index
    %3 = vector.load %arg2[%c0, %c0_1] : memref<8x1xi32, #tpu.memory_space<vmem>>, vector<8x1xi32>
    %c0_2 = arith.constant 0 : index
    %c0_3 = arith.constant 0 : index
    %4 = vector.load %arg3[%c0_2, %c0_3] : memref<8x4xf32, #tpu.memory_space<vmem>>, vector<8x4xf32>
    %cst = arith.constant 0.00999999977 : f32
    %cst_4 = arith.constant 9.900000e-01 : f32
    %5 = vector.broadcast %cst : f32 to vector<8x4xf32>
    %6 = arith.maximumf %5, %4 : vector<8x4xf32>
    %7 = vector.broadcast %cst_4 : f32 to vector<8x4xf32>
    %8 = arith.minimumf %7, %6 : vector<8x4xf32>
    %c0_5 = arith.constant 0 : index
    %c0_6 = arith.constant 0 : index
    %9 = vector.load %arg4[%c0_5, %c0_6] : memref<1x4xf32, #tpu.memory_space<vmem>>, vector<1x4xf32>
    %10 = tpu.iota {dimensions = array<i32: 1>} : vector<8x4xi32>
    %11 = vector.broadcast %3 : vector<8x1xi32> to vector<8x4xi32>
    %12 = arith.cmpi eq, %10, %11 : vector<8x4xi32>
    %13 = arith.extui %12 : vector<8x4xi1> to vector<8x4xi32>
    %14 = arith.sitofp %13 : vector<8x4xi32> to vector<8x4xf32>
    %15 = arith.mulf %14, %8 : vector<8x4xf32>
    %cst_7 = arith.constant dense<0.000000e+00> : vector<8xf32>
    %16 = vector.multi_reduction <add>, %15, %cst_7 [1] : vector<8x4xf32> to vector<8xf32>
    %17 = vector.shape_cast %16 : vector<8xf32> to vector<8x1xf32>
    %18 = vector.broadcast %9 : vector<1x4xf32> to vector<8x4xf32>
    %19 = arith.mulf %14, %18 : vector<8x4xf32>
    %cst_8 = arith.constant dense<0.000000e+00> : vector<8xf32>
    %20 = vector.multi_reduction <add>, %19, %cst_8 [1] : vector<8x4xf32> to vector<8xf32>
    %21 = vector.shape_cast %20 : vector<8xf32> to vector<8x1xf32>
    %cst_9 = arith.constant 0.00999999977 : f32
    %22 = vector.broadcast %cst_9 : f32 to vector<8x1xf32>
    %23 = arith.addf %17, %22 : vector<8x1xf32>
    %24 = math.log %23 : vector<8x1xf32>
    %cst_10 = arith.constant 9.900000e-01 : f32
    %25 = vector.broadcast %cst_10 : f32 to vector<8x1xf32>
    %26 = arith.subf %25, %17 : vector<8x1xf32>
    %27 = arith.mulf %26, %26 : vector<8x1xf32>
    %cst_11 = arith.constant 1.000000e+00 : f32
    %28 = vector.broadcast %cst_11 : f32 to vector<8x1xf32>
    %29 = arith.addf %27, %28 : vector<8x1xf32>
    %30 = arith.mulf %29, %24 : vector<8x1xf32>
    %31 = arith.subf %26, %30 : vector<8x1xf32>
    %32 = arith.mulf %21, %31 : vector<8x1xf32>
    %33 = tpu.iota {dimensions = array<i32: 0>} : vector<8x1xi32>
    %c1_i32 = arith.constant 1 : i32
    %34 = arith.muli %arg0, %c1_i32 : i32
    %35 = arith.addi %34, %arg1 : i32
    %c8_i32 = arith.constant 8 : i32
    %36 = arith.muli %35, %c8_i32 : i32
    %37 = vector.broadcast %36 : i32 to vector<8x1xi32>
    %38 = arith.addi %37, %33 : vector<8x1xi32>
    %c8_i32_12 = arith.constant 8 : i32
    %39 = vector.broadcast %c8_i32_12 : i32 to vector<8x1xi32>
    %40 = arith.cmpi slt, %38, %39 : vector<8x1xi32>
    %cst_13 = arith.constant 0.000000e+00 : f32
    %41 = vector.broadcast %cst_13 : f32 to vector<8x1xf32>
    %42 = arith.select %40, %32, %41 : vector<8x1xi1>, vector<8x1xf32>
    %c0_14 = arith.constant 0 : index
    %43 = memref.load %arg6[%c0_14] : memref<1xf32, #tpu.memory_space<smem>>
    %44 = vector.shape_cast %42 : vector<8x1xf32> to vector<1x8x1xf32>
    %cst_15 = arith.constant dense<0.000000e+00> : vector<1xf32>
    %45 = vector.multi_reduction <add>, %44, %cst_15 [1, 2] : vector<1x8x1xf32> to vector<1xf32>
    %46 = vector.shape_cast %45 : vector<1xf32> to vector<1x1x1xf32>
    %47 = vector.extract %46[0, 0, 0] : f32 from vector<1x1x1xf32>
    %48 = arith.addf %43, %47 : f32
    %c0_16 = arith.constant 0 : index
    %49 = memref.load %arg6[%c0_16] : memref<1xf32, #tpu.memory_space<smem>>
    memref.store %48, %arg6[%c0_16] : memref<1xf32, #tpu.memory_space<smem>>
    %c0_i32_17 = arith.constant 0 : i32
    %50 = arith.cmpi eq, %arg1, %c0_i32_17 : i32
    %51 = arith.extui %50 : i1 to i32
    %c0_i32_18 = arith.constant 0 : i32
    %52 = arith.cmpi ne, %51, %c0_i32_18 : i32
    scf.if %52 {
      %c0_19 = arith.constant 0 : index
      %53 = memref.load %arg6[%c0_19] : memref<1xf32, #tpu.memory_space<smem>>
      %c0_20 = arith.constant 0 : index
      %c0_21 = arith.constant 0 : index
      %54 = memref.load %arg5[%c0_20, %c0_21] : memref<1x1xf32, #tpu.memory_space<smem>>
      memref.store %53, %arg5[%c0_20, %c0_21] : memref<1x1xf32, #tpu.memory_space<smem>>
    } else {
    }
    return
  }
  func.func @transform_0(%arg0: i32, %arg1: i32) -> (i32, i32) {
    %c1_i32 = arith.constant 1 : i32
    %0 = arith.muli %arg0, %c1_i32 : i32
    %1 = arith.addi %0, %arg1 : i32
    %c0_i32 = arith.constant 0 : i32
    %2 = arith.minsi %1, %c0_i32 : i32
    %c0_i32_0 = arith.constant 0 : i32
    %c0_i32_1 = arith.constant 0 : i32
    return %2, %c0_i32_0 : i32, i32
  }
  func.func @transform_1(%arg0: i32, %arg1: i32) -> (i32, i32) {
    %c1_i32 = arith.constant 1 : i32
    %0 = arith.muli %arg0, %c1_i32 : i32
    %1 = arith.addi %0, %arg1 : i32
    %c0_i32 = arith.constant 0 : i32
    %2 = arith.minsi %1, %c0_i32 : i32
    %c0_i32_0 = arith.constant 0 : i32
    %c0_i32_1 = arith.constant 0 : i32
    return %2, %c0_i32_0 : i32, i32
  }
  func.func @transform_2(%arg0: i32, %arg1: i32) -> (i32, i32) {
    %c0_i32 = arith.constant 0 : i32
    %c0_i32_0 = arith.constant 0 : i32
    %c0_i32_1 = arith.constant 0 : i32
    return %c0_i32, %c0_i32_0 : i32, i32
  }
  func.func @transform_3(%arg0: i32, %arg1: i32) -> (i32, i32) {
    %c0_i32 = arith.constant 0 : i32
    %c0_i32_0 = arith.constant 0 : i32
    return %arg0, %c0_i32 : i32, i32
  }
}

</mosaic_0001>

<bundles_post_ra>
// kernel: tpu_custom_call.1
= control target key start
LH: loop header
LB: loop body
LE: loop exit
PB: predicated region body
PF: predicated region fallthrough
CT: control target
= control target key end

     0   :  { %v186_v1 = vmov 0   ;;  %s221_s0 = inlined_call_operand.vmem [shape: s32[8,1], index: 0, kind: input, shape index: {}]   ;;  %s222_s1 = inlined_call_operand.vmem [shape: f32[8,4], index: 1, kind: input, shape index: {}]   ;;  %s223_s2 = inlined_call_operand.vmem [shape: f32[1,4], index: 2, kind: input, shape index: {}]   ;;  %s224_s3 = inlined_call_operand.hbm [shape: f32[1,1], index: 3, kind: output, shape index: {}]  }
   0x1   :  { %v75_v0 = vld [vmem:[%s221_s0] sm:$0xff]  ;;  %173 = vset.pattern.permute.xlu0 %v186_v1 }
   0x2   :  { %8 = vsyncpa [#allocation4], 0  ;;  %83 = vperm.xlu0 %173, %v75_v0   ;;  %v76_v2 = vld [vmem:[%s222_s1] sm:$0xff]  ;;  %v80_v3 = vlaneseq  ;;  %v187_v9 = vmov 0.0   ;;  %vm89_vm1 = vcmask 31744   ;;  %vm121_vm2 = vcmask 7168  }
   0x3   :  { %v77_v4 = vmax.f32 %v76_v2, 0.01  ;;  %v167_v8 = vld [vmem:[%s223_s2] ss:$0 sm:$0xff]  ;;  %s188_s1 = smov [#allocation3]  }
   0x4   :  { %v81_v5 = vand.u32 127, %v80_v3 }
   0x5   :  { %v78_v6 = vmin.f32 %v77_v4, 0.99 }
  0x7d   :  { %v84_v7 = vpop.permute.xlu0 %83 }
  0x7e   :  { %vm85_vm0 = vcmp.eq.s32.totalorder %v81_v5, %v84_v7 }
  0x7f   :  { %v166_v10 = vsel %vm85_vm0, 1.0, %v187_v9 }
  0x80   :  { %v99_v11 = vmul.f32 %v167_v8, %v166_v10  ;;  %v88_v12 = vmul.f32 %v166_v10, %v78_v6 }
  0x82   :  { %v100_v13 = vsel %vm89_vm1, %v99_v11, 0.0  ;;  %v90_v14 = vsel %vm89_vm1, %v88_v12, 0.0 }
  0x83   :  { %101 = vadd.xlane.f32.xlu1 %v100_v13  ;;  %91 = vadd.xlane.f32.xlu0 %v90_v14 }
 0x10c   :  { %v92_v15 = vpop.xlane.xlu0 %91  ;;  %v102_v24 = vpop.xlane.xlu1 %101 }
 0x10d   :  { %v103_v16 = vadd.f32 0.01, %v92_v15  ;;  %v106_v17 = vsub.f32 0.99, %v92_v15 }
 0x10f   :  { %174 = vlog2.f32 %v103_v16  ;;  %v107_v18 = vmul.f32 %v106_v17, %v106_v17 }
 0x111   :  { %v108_v21 = vadd.f32 1.0, %v107_v18 }
 0x11c   :  { %v175_v19 = vpop.eup %174 }
 0x11d   :  { %v105_v20 = vmul.f32 0.6931472, %v175_v19 }
 0x11f   :  { %v109_v22 = vmul.f32 %v108_v21, %v105_v20 }
 0x121   :  { %v110_v23 = vsub.f32 %v106_v17, %v109_v22 }
 0x123   :  { %v111_v25 = vmul.f32 %v110_v23, %v102_v24 }
 0x125   :  { %v122_v26 = vsel %vm121_vm2, %v111_v25, 0.0 }
 0x126   :  { %123 = vadd.xlane.f32.xlu1 %v122_v26 }
 0x1af   :  { %v124_v27 = vpop.xlane.xlu1 %123 }
 0x1b0   :  { %v125_v28 = vrot.slane %v124_v27, 4 }
 0x1b2   :  { %v126_v29 = vadd.f32 %v125_v28, %v124_v27 }
 0x1b4   :  { %v127_v30 = vrot.slane %v126_v29, 2 }
 0x1b6   :  { %v128_v31 = vadd.f32 %v127_v30, %v126_v29 }
 0x1b8   :  { %v129_v32 = vrot.slane %v128_v31, 1 }
 0x1ba   :  { %v130_v33 = vadd.f32 %v129_v32, %v128_v31 }
 0x1bc   :  { %168 = vpush %v130_v33 }
 0x1ed   :  { %s169_s0 = spop %168 }
 0x1ee   :  { %140 = sst [smem:[#allocation3]] %s169_s0 }
 0x1ef   :  { %148 = dma.smem_to_hbm %s188_s1, 16, %s224_s3, [#allocation4]  }
 0x1f0   :  { %184 = dma.done.wait [#allocation4], 16  }
 0x1f1   :  { %185 = vsyncadd [#allocation4], 4294967280 }
 0x1f2   :  { %152 = sfence }
 0x1f3   :  { %153 = vsyncpa [#allocation4], 1 }

</bundles_post_ra>
